<compile_context>
chip_gen: v6e
topology: v6e:2x2x1
jax: 0.10.0
libtpu: 0.0.40
codegen_flags: <defaults>
</compile_context>

<pallas_src>
import jax
import jax.numpy as jnp
from jax.experimental import pallas as pl
from jax.experimental.pallas import tpu as pltpu


def _decoder_kernel(x_ref, k_ref, dp_ref, gamma_ref, beta_ref, o_ref):
    # x_ref:     [TB, D]
    # k_ref:     [C, D]    (raw kernel, seq_len dim already squeezed)
    # dp_ref:    [C, D]
    # gamma_ref: [1, D]
    # beta_ref:  [1, D]
    # o_ref:     [TB, C, D]
    x = x_ref[...].astype(jnp.float32)            # [TB, D]
    k = k_ref[...].astype(jnp.float32)            # [C, D]
    dp = dp_ref[...].astype(jnp.float32)          # [C, D]

    # Soft-threshold: relu(|k| - 0.1) * sign(k) == k - clip(k, -0.1, 0.1).
    # Grid-invariant but tiny ([C, D] elementwise) -> recomputed per step so
    # the kernel stays correct when the batch axis is sharded across cores.
    w = (k - jnp.clip(k, -0.1, 0.1)) + dp         # [C, D]

    # y[b,c,d] = x[b,d] * w[c,d]
    y = x[:, None, :] * w[None, :, :]             # [TB, C, D]

    # Fused one-pass LayerNorm statistics over the last dim (biased var).
    d = y.shape[-1]
    inv_d = jnp.float32(1.0 / d)
    s1 = jnp.sum(y, axis=-1, keepdims=True)       # [TB, C, 1]
    s2 = jnp.sum(y * y, axis=-1, keepdims=True)   # [TB, C, 1]
    mean = s1 * inv_d
    var = jnp.maximum(s2 * inv_d - mean * mean, 0.0)
    inv = jax.lax.rsqrt(var + 1e-5)

    gamma = gamma_ref[...][None, :, :]            # [1, 1, D]
    beta = beta_ref[...][None, :, :]              # [1, 1, D]
    ln = (y - mean) * inv * gamma + beta

    o_ref[...] = (y + ln).astype(o_ref.dtype)


def long_conv_sequence_decoder(x, kernel, dparam, gamma, beta, *, tb=None):
    """x: [B, D]; kernel: [C, D, 1]; dparam: [C, D]; gamma/beta: [D].

    Returns [B, C, D], matching LongConvSequenceDecoder.forward.
    """
    B, D = x.shape
    C = kernel.shape[0]
    k2d = kernel[:, :, 0]                         # [C, D]
    gamma2d = gamma.reshape(1, D)
    beta2d = beta.reshape(1, D)

    # Tile over the batch dim. Target ~1 MiB per output buffer (Pallas keeps
    # two in flight) so the live set stays well inside v7x's 64 MiB VMEM
    # while tiles stay large enough to amortize per-grid-step overhead.
    TILE_BYTES = 1 << 20
    if tb is None:
        tb = max(1, min(B, TILE_BYTES // (C * D * 4)))
    if tb >= B:
        tb = B                                    # full-dim block: always legal
    else:
        tb = min(B, max(8, (tb // 8) * 8))        # keep sublane tile a multiple of 8
    grid = (pl.cdiv(B, tb),)

    out = pl.pallas_call(
        _decoder_kernel,
        out_shape=jax.ShapeDtypeStruct((B, C, D), jnp.float32),
        grid=grid,
        in_specs=[
            pl.BlockSpec((tb, D), lambda i: (i, 0)),     # x: streamed per tile
            pl.BlockSpec((C, D), lambda i: (0, 0)),      # kernel: VMEM-resident
            pl.BlockSpec((C, D), lambda i: (0, 0)),      # Dparam: VMEM-resident
            pl.BlockSpec((1, D), lambda i: (0, 0)),      # gamma:  VMEM-resident
            pl.BlockSpec((1, D), lambda i: (0, 0)),      # beta:   VMEM-resident
        ],
        out_specs=pl.BlockSpec((tb, C, D), lambda i: (i, 0, 0)),
        compiler_params=pltpu.CompilerParams(
            dimension_semantics=("parallel",),           # megacore on v7x
            vmem_limit_bytes=32 * 1024 * 1024,
        ),
    )(x, k2d, dparam, gamma2d, beta2d)
    return out


def reference(x, kernel, dparam, gamma, beta):
    # Pure-JAX reference of the same math (FFT path collapsed analytically).
    k = kernel[:, :, 0]
    k_thr = jnp.maximum(jnp.abs(k) - 0.1, 0.0) * jnp.sign(k)
    w = k_thr + dparam
    y = x[:, None, :] * w[None, :, :]
    mean = jnp.mean(y, axis=-1, keepdims=True)
    var = jnp.mean((y - mean) ** 2, axis=-1, keepdims=True)
    ln = (y - mean) / jnp.sqrt(var + 1e-5) * gamma + beta
    return y + ln


if __name__ == "__main__":
    # Small, deterministic shapes: batch=2, d_model=32, channels=4.
    B, D, C = 2, 32, 4
    key = jax.random.PRNGKey(0)
    k_x, k_k, k_d, k_g, k_b, k_x2 = jax.random.split(key, 6)

    x = jax.random.normal(k_x, (B, D), dtype=jnp.float32)
    conv_kernel = jax.random.normal(k_k, (C, D, 1), dtype=jnp.float32)  # [C, d_model, seq_len=1]
    conv_D = jax.random.normal(k_d, (C, D), dtype=jnp.float32)          # [C, d_model]
    ln_gamma = 1.0 + 0.1 * jax.random.normal(k_g, (D,), dtype=jnp.float32)
    ln_beta = 0.1 * jax.random.normal(k_b, (D,), dtype=jnp.float32)

    out = long_conv_sequence_decoder(x, conv_kernel, conv_D, ln_gamma, ln_beta)
    out = jax.block_until_ready(out)
    ref = reference(x, conv_kernel, conv_D, ln_gamma, ln_beta)
    assert out.shape == (B, C, D)
    assert jnp.allclose(out, ref, atol=1e-4, rtol=1e-4), "mismatch vs reference (B=2)"

    # Second check: multi-step grid (tb=8 over B=16) to exercise the tiled,
    # double-buffered path with a VMEM-resident weight block.
    B2 = 16
    x2 = jax.random.normal(k_x2, (B2, D), dtype=jnp.float32)
    out2 = long_conv_sequence_decoder(x2, conv_kernel, conv_D, ln_gamma, ln_beta, tb=8)
    out2 = jax.block_until_ready(out2)
    ref2 = reference(x2, conv_kernel, conv_D, ln_gamma, ln_beta)
    assert out2.shape == (B2, C, D)
    assert jnp.allclose(out2, ref2, atol=1e-4, rtol=1e-4), "mismatch vs reference (B=16)"

    print("KERNEL_OK")
</pallas_src>

<mosaic_0001>
module attributes {stable_mosaic.version = 11 : i64} {
  func.func @_decoder_kernel(%arg0: i32, %arg1: memref<2x32xf32, #tpu.memory_space<vmem>>, %arg2: memref<4x32xf32, #tpu.memory_space<vmem>>, %arg3: memref<4x32xf32, #tpu.memory_space<vmem>>, %arg4: memref<1x32xf32, #tpu.memory_space<vmem>>, %arg5: memref<1x32xf32, #tpu.memory_space<vmem>>, %arg6: memref<2x4x32xf32, #tpu.memory_space<vmem>>) attributes {dimension_semantics = [#tpu.dimension_semantics<parallel>], iteration_bounds = array<i64: 1>, scalar_prefetch = 0 : i64, scratch_operands = 0 : i64, tpu.core_type = #tpu.core_type<tc>, window_params = [{transform_indices = @transform_0, window_bounds = array<i64: 2, 32>}, {pipeline_mode = #tpu.pipeline_mode<synchronous>, transform_indices = @transform_1, window_bounds = array<i64: 4, 32>}, {pipeline_mode = #tpu.pipeline_mode<synchronous>, transform_indices = @transform_2, window_bounds = array<i64: 4, 32>}, {pipeline_mode = #tpu.pipeline_mode<synchronous>, transform_indices = @transform_3, window_bounds = array<i64: 1, 32>}, {pipeline_mode = #tpu.pipeline_mode<synchronous>, transform_indices = @transform_4, window_bounds = array<i64: 1, 32>}, {transform_indices = @transform_5, window_bounds = array<i64: 2, 4, 32>}]} {
    %c0 = arith.constant 0 : index
    %c0_0 = arith.constant 0 : index
    %0 = vector.load %arg1[%c0, %c0_0] : memref<2x32xf32, #tpu.memory_space<vmem>>, vector<2x32xf32>
    %c0_1 = arith.constant 0 : index
    %c0_2 = arith.constant 0 : index
    %1 = vector.load %arg2[%c0_1, %c0_2] : memref<4x32xf32, #tpu.memory_space<vmem>>, vector<4x32xf32>
    %c0_3 = arith.constant 0 : index
    %c0_4 = arith.constant 0 : index
    %2 = vector.load %arg3[%c0_3, %c0_4] : memref<4x32xf32, #tpu.memory_space<vmem>>, vector<4x32xf32>
    %cst = arith.constant -1.000000e-01 : f32
    %cst_5 = arith.constant 1.000000e-01 : f32
    %3 = vector.broadcast %cst : f32 to vector<4x32xf32>
    %4 = arith.maximumf %3, %1 : vector<4x32xf32>
    %5 = vector.broadcast %cst_5 : f32 to vector<4x32xf32>
    %6 = arith.minimumf %5, %4 : vector<4x32xf32>
    %7 = arith.subf %1, %6 : vector<4x32xf32>
    %8 = arith.addf %7, %2 : vector<4x32xf32>
    %9 = vector.shape_cast %0 : vector<2x32xf32> to vector<2x1x32xf32>
    %10 = vector.shape_cast %8 : vector<4x32xf32> to vector<1x4x32xf32>
    %11 = vector.broadcast %9 : vector<2x1x32xf32> to vector<2x4x32xf32>
    %12 = vector.broadcast %10 : vector<1x4x32xf32> to vector<2x4x32xf32>
    %13 = arith.mulf %11, %12 : vector<2x4x32xf32>
    %cst_6 = arith.constant dense<0.000000e+00> : vector<2x4xf32>
    %14 = vector.multi_reduction <add>, %13, %cst_6 [2] : vector<2x4x32xf32> to vector<2x4xf32>
    %15 = vector.shape_cast %14 : vector<2x4xf32> to vector<2x4x1xf32>
    %16 = arith.mulf %13, %13 : vector<2x4x32xf32>
    %cst_7 = arith.constant dense<0.000000e+00> : vector<2x4xf32>
    %17 = vector.multi_reduction <add>, %16, %cst_7 [2] : vector<2x4x32xf32> to vector<2x4xf32>
    %18 = vector.shape_cast %17 : vector<2x4xf32> to vector<2x4x1xf32>
    %cst_8 = arith.constant 3.125000e-02 : f32
    %19 = vector.broadcast %cst_8 : f32 to vector<2x4x1xf32>
    %20 = arith.mulf %15, %19 : vector<2x4x1xf32>
    %cst_9 = arith.constant 3.125000e-02 : f32
    %21 = vector.broadcast %cst_9 : f32 to vector<2x4x1xf32>
    %22 = arith.mulf %18, %21 : vector<2x4x1xf32>
    %23 = arith.mulf %20, %20 : vector<2x4x1xf32>
    %24 = arith.subf %22, %23 : vector<2x4x1xf32>
    %cst_10 = arith.constant 0.000000e+00 : f32
    %25 = vector.broadcast %cst_10 : f32 to vector<2x4x1xf32>
    %26 = arith.maximumf %24, %25 : vector<2x4x1xf32>
    %cst_11 = arith.constant 9.99999974E-6 : f32
    %27 = vector.broadcast %cst_11 : f32 to vector<2x4x1xf32>
    %28 = arith.addf %26, %27 : vector<2x4x1xf32>
    %29 = math.rsqrt %28 : vector<2x4x1xf32>
    %c0_12 = arith.constant 0 : index
    %c0_13 = arith.constant 0 : index
    %30 = vector.load %arg4[%c0_12, %c0_13] : memref<1x32xf32, #tpu.memory_space<vmem>>, vector<1x32xf32>
    %31 = vector.shape_cast %30 : vector<1x32xf32> to vector<1x1x32xf32>
    %c0_14 = arith.constant 0 : index
    %c0_15 = arith.constant 0 : index
    %32 = vector.load %arg5[%c0_14, %c0_15] : memref<1x32xf32, #tpu.memory_space<vmem>>, vector<1x32xf32>
    %33 = vector.shape_cast %32 : vector<1x32xf32> to vector<1x1x32xf32>
    %34 = vector.broadcast %20 : vector<2x4x1xf32> to vector<2x4x32xf32>
    %35 = arith.subf %13, %34 : vector<2x4x32xf32>
    %36 = vector.broadcast %29 : vector<2x4x1xf32> to vector<2x4x32xf32>
    %37 = arith.mulf %35, %36 : vector<2x4x32xf32>
    %38 = vector.broadcast %31 : vector<1x1x32xf32> to vector<2x4x32xf32>
    %39 = arith.mulf %37, %38 : vector<2x4x32xf32>
    %40 = vector.broadcast %33 : vector<1x1x32xf32> to vector<2x4x32xf32>
    %41 = arith.addf %39, %40 : vector<2x4x32xf32>
    %42 = arith.addf %13, %41 : vector<2x4x32xf32>
    %c0_16 = arith.constant 0 : index
    %c0_17 = arith.constant 0 : index
    %c0_18 = arith.constant 0 : index
    %43 = vector.load %arg6[%c0_16, %c0_17, %c0_18] : memref<2x4x32xf32, #tpu.memory_space<vmem>>, vector<2x4x32xf32>
    tpu.vector_store %arg6[%c0_16, %c0_17, %c0_18], %42 {strides = array<i32>} : memref<2x4x32xf32, #tpu.memory_space<vmem>>, vector<2x4x32xf32>,
    return
  }
  func.func @transform_0(%arg0: i32) -> (i32, i32) {
    %c0_i32 = arith.constant 0 : i32
    %c0_i32_0 = arith.constant 0 : i32
    return %arg0, %c0_i32 : i32, i32
  }
  func.func @transform_1(%arg0: i32) -> (i32, i32) {
    %c0_i32 = arith.constant 0 : i32
    %c0_i32_0 = arith.constant 0 : i32
    %c0_i32_1 = arith.constant 0 : i32
    return %c0_i32, %c0_i32_0 : i32, i32
  }
  func.func @transform_2(%arg0: i32) -> (i32, i32) {
    %c0_i32 = arith.constant 0 : i32
    %c0_i32_0 = arith.constant 0 : i32
    %c0_i32_1 = arith.constant 0 : i32
    return %c0_i32, %c0_i32_0 : i32, i32
  }
  func.func @transform_3(%arg0: i32) -> (i32, i32) {
    %c0_i32 = arith.constant 0 : i32
    %c0_i32_0 = arith.constant 0 : i32
    %c0_i32_1 = arith.constant 0 : i32
    return %c0_i32, %c0_i32_0 : i32, i32
  }
  func.func @transform_4(%arg0: i32) -> (i32, i32) {
    %c0_i32 = arith.constant 0 : i32
    %c0_i32_0 = arith.constant 0 : i32
    %c0_i32_1 = arith.constant 0 : i32
    return %c0_i32, %c0_i32_0 : i32, i32
  }
  func.func @transform_5(%arg0: i32) -> (i32, i32, i32) {
    %c0_i32 = arith.constant 0 : i32
    %c0_i32_0 = arith.constant 0 : i32
    %c0_i32_1 = arith.constant 0 : i32
    return %arg0, %c0_i32, %c0_i32_0 : i32, i32, i32
  }
}

</mosaic_0001>

<bundles_post_ra>
// kernel: tpu_custom_call.1
= control target key start
LH: loop header
LB: loop body
LE: loop exit
PB: predicated region body
PF: predicated region fallthrough
CT: control target
= control target key end

     0   :  { %10 = vsyncpa [#allocation3], 0  ;;  %s333_s0 = inlined_call_operand.hbm [shape: f32[2,32], index: 0, kind: input, shape index: {}]   ;;  %s334_s1 = inlined_call_operand.hbm [shape: f32[4,32], index: 1, kind: input, shape index: {}]   ;;  %s335_s2 = inlined_call_operand.hbm [shape: f32[4,32], index: 2, kind: input, shape index: {}]   ;;  %s336_s3 = inlined_call_operand.vmem [shape: f32[1,32], index: 3, kind: input, shape index: {}]   ;;  %s337_s4 = inlined_call_operand.vmem [shape: f32[1,32], index: 4, kind: input, shape index: {}]   ;;  %s338_s5 = inlined_call_operand.hbm [shape: f32[2,4,32], index: 5, kind: output, shape index: {}]  }
   0x1   :  { %11 = vsyncpa [#allocation6], 0 }
   0x2   :  { %12 = vsyncpa [#allocation4], 0  ;;  %s272_s18 = smov [#allocation5]   ;;  %s273_s20 = smov [#allocation2]  }
   0x3   :  { %s29_s19 = sshll.u32 %s272_s18, 4  ;;  %s19_s21 = sshll.u32 %s273_s20, 4  ;;  %s30_s19 = int_to_ptr.vmem [resolvable:$true] %s29_s19  ;;  %s20_s21 = int_to_ptr.vmem [resolvable:$true] %s19_s21 }
   0x4   :  { %s194_s22 = scalar_lea.vmem %s30_s19, 64  ;;  %p199_p1 = scmp.lt.s32.totalorder %s30_s19, %s30_s19 }
   0x5   :  { %p195_p0 = scmp.ne.s32.totalorder %s30_s19, %s194_s22  ;;  %p200_p2 = scmp.lt.s32.totalorder %s194_s22, %s194_s22 }
   0x7   :  { %p201_p3 = por %p200_p2, %p199_p1 }
   0x9   :  { %p202_p4 = pnand %p201_p3, %p195_p0 }
   0xb   :  { %205 = shalt.err (!%p202_p4)
}
   0xc   :  { %32 = dma.hbm_to_vmem [thread:$0]  %s334_s1, 64, %s30_s19, [#allocation6]  }
   0xd   :  { %s214_s25 = scalar_lea.vmem %s20_s21, 32  ;;  %p219_p6 = scmp.lt.s32.totalorder %s20_s21, %s20_s21 }
   0xe   :  { %p215_p5 = scmp.ne.s32.totalorder %s20_s21, %s214_s25  ;;  %p220_p7 = scmp.lt.s32.totalorder %s214_s25, %s214_s25 }
  0x10   :  { %p221_p8 = por %p220_p7, %p219_p6 }
  0x12   :  { %p222_p9 = pnand %p221_p8, %p215_p5 }
  0x14   :  { %225 = shalt.err (!%p222_p9)
}
  0x15   :  { %22 = dma.hbm_to_vmem [thread:$0]  %s333_s0, 32, %s20_s21, [#allocation3]  }
  0x16   :  { %s274_s28 = smov [#allocation7]  }
  0x17   :  { %s39_s29 = sshll.u32 %s274_s28, 4  ;;  %s40_s29 = int_to_ptr.vmem [resolvable:$true] %s39_s29 }
  0x18   :  { %s234_s30 = scalar_lea.vmem %s40_s29, 64  ;;  %p239_p11 = scmp.lt.s32.totalorder %s40_s29, %s40_s29 }
  0x19   :  { %p235_p10 = scmp.ne.s32.totalorder %s40_s29, %s234_s30  ;;  %p240_p12 = scmp.lt.s32.totalorder %s234_s30, %s234_s30 }
  0x1b   :  { %p241_p13 = por %p240_p12, %p239_p11 }
  0x1d   :  { %p242_p0 = pnand %p241_p13, %p235_p10 }
  0x1f   :  { %245 = shalt.err (!%p242_p0)
}
  0x20   :  { %42 = dma.hbm_to_vmem [thread:$0]  %s335_s2, 64, %s40_s29, [#allocation6]  }
  0x21   :  { %266 = dma.done.wait [#allocation3], 32  }
  0x22   :  { %267 = vsyncadd [#allocation3], 4294967264 }
  0x23   :  { %268 = dma.done.wait [#allocation6], 128  }
  0x24   :  { %269 = vsyncadd [#allocation6], 4294967168  ;;  %v75_v0 = vlaneseq  ;;  %v275_v1 = vmov 1966171168   ;;  %v57_v8 = vld [vmem:[#allocation5] sm:$0xf] }
  0x25   :  { %v73_v2 = vunpack.c.l.s4 %v275_v1  ;;  %v172_v7 = vld.sshfl [vmem:[#allocation2] sm:$0x11 pattern:$0x75316420]  ;;  %v171_v9 = vclamps-f32 %v57_v8, 0.1 }
  0x26   :  { %v76_v3 = vshrl.u32 %v75_v0, 7  ;;  %v71_v11 = vcombine.high %v172_v7, %v172_v7  ;;  %v58_v12 = vld [vmem:[#allocation7] sm:$0xf]  ;;  %vm98_vm0 = vcmask 257024   ;;  %v173_v44 = vld [vmem:[%s336_s3] ss:$0 sm:$0xff] }
  0x27   :  { %v74_v4 = vunpack.c.0.s8 %v73_v2  ;;  %v61_v13 = vsub.f32 %v57_v8, %v171_v9  ;;  %v174_v46 = vld [vmem:[%s337_s4] ss:$0 sm:$0xff]  ;;  %s276_s9 = smov [#allocation8]  }
  0x28   :  { %v88_v6 = vsub.s32 0, %v76_v3  ;;  %s158_s10 = sshll.u32 %s276_s9, 4  ;;  %s159_s10 = int_to_ptr.vmem [resolvable:$true] %s158_s10 }
  0x29   :  { %v77_v5 = vsub.s32 %v74_v4, %v76_v3  ;;  %v62_v16 = vadd.f32 %v61_v13, %v58_v12  ;;  %s246_s3 = scalar_lea.vmem %s159_s10, 128  ;;  %p251_p2 = scmp.lt.s32.totalorder %s159_s10, %s159_s10 }
  0x2a   :  { %p247_p1 = scmp.ne.s32.totalorder %s159_s10, %s246_s3  ;;  %p252_p3 = scmp.lt.s32.totalorder %s246_s3, %s246_s3 }
  0x2b   :  { %v78_v10 = vrot.slane %v172_v7, %v77_v5  ;;  %v85_v15 = vrot.slane %v71_v11, %v77_v5 }
  0x2c   :  { %p253_p4 = por %p252_p3, %p251_p2 }
  0x2d   :  { %v89_v14 = vrot.slane %v78_v10, %v88_v6  ;;  %v93_v17 = vrot.slane %v85_v15, %v88_v6 }
  0x2e   :  { %p254_p5 = pnand %p253_p4, %p247_p1 }
  0x2f   :  { %v96_v18 = vmul.f32 %v89_v14, %v62_v16  ;;  %v97_v19 = vmul.f32 %v93_v17, %v62_v16 }
  0x31   :  { %v99_v20 = vsel %vm98_vm0, %v96_v18, 0.0  ;;  %v105_v21 = vmul.f32 %v96_v18, %v96_v18  ;;  %v106_v22 = vmul.f32 %v97_v19, %v97_v19  ;;  %v102_v24 = vsel %vm98_vm0, %v97_v19, 0.0 }
  0x32   :  { %100 = vadd.xlane.f32.xlu0 %v99_v20 }
  0x33   :  { %v107_v23 = vsel %vm98_vm0, %v105_v21, 0.0  ;;  %v110_v25 = vsel %vm98_vm0, %v106_v22, 0.0 }
  0x34   :  { %108 = vadd.xlane.f32.xlu1 %v107_v23 }
  0x36   :  { %103 = vadd.xlane.f32.xlu0 %v102_v24 }
  0x38   :  { %111 = vadd.xlane.f32.xlu1 %v110_v25 }
  0xbb   :  { %v101_v26 = vpop.xlane.xlu0 %100 }
  0xbc   :  { %v113_v27 = vmul.f32 0.03125, %v101_v26 }
  0xbd   :  { %v109_v28 = vpop.xlane.xlu1 %108 }
  0xbe   :  { %v117_v29 = vmul.f32 %v113_v27, %v113_v27  ;;  %v115_v30 = vmul.f32 0.03125, %v109_v28  ;;  %v129_v42 = vsub.f32 %v96_v18, %v113_v27 }
  0xbf   :  { %v104_v31 = vpop.xlane.xlu0 %103 }
  0xc0   :  { %v119_v32 = vsub.f32 %v115_v30, %v117_v29  ;;  %v114_v33 = vmul.f32 0.03125, %v104_v31 }
  0xc1   :  { %v112_v34 = vpop.xlane.xlu1 %111 }
  0xc2   :  { %v121_v35 = vmax.f32 %v119_v32, 0.0  ;;  %v118_v36 = vmul.f32 %v114_v33, %v114_v33  ;;  %v116_v37 = vmul.f32 0.03125, %v112_v34  ;;  %v130_v47 = vsub.f32 %v97_v19, %v114_v33 }
  0xc4   :  { %v123_v38 = vadd.f32 1e-05, %v121_v35  ;;  %v120_v39 = vsub.f32 %v116_v37, %v118_v36 }
  0xc6   :  { %182 = vrsqrt.f32 %v123_v38  ;;  %v122_v40 = vmax.f32 %v120_v39, 0.0 }
  0xc8   :  { %v124_v41 = vadd.f32 1e-05, %v122_v40 }
  0xca   :  { %184 = vrsqrt.f32 %v124_v41 }
  0xd3   :  { %v183_v43 = vpop.eup %182 }
  0xd4   :  { %v131_v45 = vmul.f32 %v183_v43, %v129_v42 }
  0xd6   :  { %v139_v48 = vmul.f32 %v173_v44, %v131_v45 }
  0xd7   :  { %v185_v49 = vpop.eup %184 }
  0xd8   :  { %v132_v50 = vmul.f32 %v185_v49, %v130_v47  ;;  %v147_v51 = vadd.f32 %v174_v46, %v139_v48 }
  0xda   :  { %v140_v52 = vmul.f32 %v173_v44, %v132_v50  ;;  %v149_v53 = vadd.f32 %v147_v51, %v96_v18 }
  0xdc   :  { %v148_v54 = vadd.f32 %v174_v46, %v140_v52  ;;  %151 = vst.msk [vmem:[#allocation8] sm:$0xf] %vm98_vm0, %v149_v53 }
  0xde   :  { %v150_v55 = vadd.f32 %v148_v54, %v97_v19 }
  0xe0   :  { %152 = vst.msk [vmem:[#allocation8 + $0x4] sm:$0xf] %vm98_vm0, %v150_v55 }
  0xe1   :  { %257 = shalt.err (!%p254_p5)
}
  0xe2   :  { %s277_s4 = smov 64   ;;  %s278_s11 = smov 4  }
  0xe3   :  { %164 = dma.vmem_to_hbm [thread:$0]  %s159_s10, 128, %s338_s5, [#allocation4], %s277_s4, %s277_s4, %s278_s11  }
  0xe4   :  { %270 = dma.done.wait [#allocation4], 128  }
  0xe5   :  { %271 = vsyncadd [#allocation4], 4294967168 }
  0xe6   :  { %168 = vsyncpa [#allocation3], 1 }
  0xe7   :  { %169 = vsyncpa [#allocation6], 1 }
  0xe8   :  { %170 = vsyncpa [#allocation4], 1 }

</bundles_post_ra>
